<compile_context>
chip_gen: v7x
topology: tpu7x:2x2x1
jax: 0.10.0
libtpu: 0.0.40
codegen_flags: <defaults>
</compile_context>

<pallas_src>
import enum
import functools
import math

import jax
import jax.numpy as jnp
from jax import lax
from jax.experimental import pallas as pl
from jax.experimental.pallas import tpu as pltpu


class AttentionOutputMode(enum.Enum):
    OUTPUT_ONLY = 0
    OUTPUT_AND_WEIGHTS = 1
    WEIGHTS_ONLY = 2


_MiB = 1024 * 1024


def _vmem_capacity_bytes() -> int:
    """Physical per-core VMEM; conservative (v7x = 64 MiB) fallback."""
    try:
        return int(pltpu.get_tpu_info().vmem_capacity_bytes)
    except Exception:
        return 64 * _MiB


def _pick_tq(sq, sk, d_att, d_model, n_heads, itemsize, attn_itemsize, tq_max,
             has_mask, write_out, write_attn, budget_bytes):
    """Largest query tile whose VMEM footprint (incl. f32 temporaries) fits."""
    # Resident, double-buffered blocks (index_map ignores the q-tile axis).
    fixed = 2 * sk * d_att * itemsize                  # K block
    if write_out:
        fixed += 2 * sk * d_model * itemsize           # V block
    cand = []
    if sq <= tq_max:
        cand.append(sq)                                # full extent: no padding
    for c in (1024, 512, 256, 128, 64, 32, 16, 8):
        if c <= min(sq, tq_max) and c not in cand:
            cand.append(c)
    if not cand:
        cand = [min(sq, tq_max)]
    for tq in cand:
        per = tq * d_att * itemsize                    # Q tile
        if write_out:
            per += tq * d_model * itemsize             # merged-head out tile
        if write_attn:
            per += tq * n_heads * sk * attn_itemsize   # attention-weights tile
        if has_mask:
            per += tq * sk                             # int8 mask tile
        interm = 3 * tq * sk * 4                       # f32 s/p/attn temporaries
        if fixed + 2 * per + interm <= budget_bytes:
            return tq
    return cand[-1]


# --------------------------------------------------------------------------
# Scaled-dot-product attention kernel: one (batch, query-tile) block,
# all heads computed in-kernel on merged-head (.., H*Dh) layout.
# --------------------------------------------------------------------------
def _sdpa_kernel(*refs, scale, n_heads, d_head_k, d_head_v, has_mask,
                 write_out, write_attn, mxu_dtype):
    i = 0
    q_ref = refs[i]; i += 1                        # (1, TQ, H*Dk)
    k_ref = refs[i]; i += 1                        # (1, Sk, H*Dk) resident
    v_ref = None
    if write_out:
        v_ref = refs[i]; i += 1                    # (1, Sk, H*Dv) resident
    mask_ref = None
    if has_mask:
        mask_ref = refs[i]; i += 1                 # (1, TQ, Sk) int8
    o_ref = None
    if write_out:
        o_ref = refs[i]; i += 1                    # (1, TQ, H*Dv)  lane-dense
    attn_ref = None
    if write_attn:
        attn_ref = refs[i]; i += 1                 # (1, H, TQ, Sk)

    keep = None
    if has_mask:
        # Loaded once per grid step and reused for every head (VMEM-resident).
        keep = mask_ref[0] != 0                    # (TQ, Sk) bool

    for h in range(n_heads):                       # static head loop
        ks = slice(h * d_head_k, (h + 1) * d_head_k)
        vs = slice(h * d_head_v, (h + 1) * d_head_v)

        # Fold 1/sqrt(Dk) into the small Q tile (TQ*Dk mults, not TQ*Sk).
        q = (q_ref[0, :, ks].astype(jnp.float32) * scale).astype(mxu_dtype)
        k = k_ref[0, :, ks].astype(mxu_dtype)

        # q @ k^T on the MXU with f32 accumulation.
        s = lax.dot_general(q, k, dimension_numbers=(((1,), (1,)), ((), ())),
                            preferred_element_type=jnp.float32)      # (TQ, Sk)

        if has_mask:
            # masked_fill(mask == 0, -inf); finite fill so fully-masked rows
            # degrade to a uniform row instead of NaN (documented divergence
            # from PyTorch's -inf semantics).
            s = jnp.where(keep, s, jnp.float32(-1e30))

        # Numerically-stable row softmax in f32 (VPU/EUP).
        s_max = jnp.max(s, axis=-1, keepdims=True)
        p = jnp.exp(s - s_max)
        denom = jnp.sum(p, axis=-1, keepdims=True)
        if write_attn:
            attn = p / denom                       # exact: weights are API-visible
        else:
            attn = p * pl.reciprocal(denom, approx=True)   # EUP vrcp slot

        if write_out:
            out_h = jnp.dot(attn.astype(mxu_dtype), v_ref[0, :, vs].astype(mxu_dtype),
                            preferred_element_type=jnp.float32)       # (TQ, Dv)
            o_ref[0, :, vs] = out_h.astype(o_ref.dtype)
        if write_attn:
            attn_ref[0, h] = attn.astype(attn_ref.dtype)


def _sdpa_pallas(qp, kp, vp, mask, *, n_heads, output_mode, tq_max,
                 use_bf16_matmul, attn_dtype):
    """qp:(B,Sq,H*Dk) kp:(B,Sk,H*Dk) vp:(B,Sk,H*Dv); mask:(B,Sq,Sk) int8|None."""
    B, Sq, d_att = qp.shape
    Sk = kp.shape[1]
    d_model = vp.shape[2]
    dtype = jnp.dtype(qp.dtype)
    itemsize = dtype.itemsize
    d_head_k = d_att // n_heads
    d_head_v = d_model // n_heads

    write_out = output_mode != AttentionOutputMode.WEIGHTS_ONLY
    write_attn = output_mode != AttentionOutputMode.OUTPUT_ONLY
    has_mask = mask is not None

    attn_out_dtype = jnp.dtype(attn_dtype) if attn_dtype is not None else dtype
    mxu_dtype = jnp.bfloat16 if (use_bf16_matmul and dtype == jnp.float32) else dtype

    vmem_cap = _vmem_capacity_bytes()
    vmem_limit = min(int(vmem_cap * 0.75), 100 * _MiB)   # ~96-100 MiB v5e/v6e, ~48 MiB v7x
    budget = int(vmem_limit * 0.80)
    if tq_max is None:
        tq_max = 1024 if vmem_cap >= 100 * _MiB else 512

    TQ = _pick_tq(Sq, Sk, d_att, d_model, n_heads, itemsize,
                  attn_out_dtype.itemsize, tq_max,
                  has_mask, write_out, write_attn, budget)
    grid = (B, pl.cdiv(Sq, TQ))                           # q-tile axis innermost

    in_specs = [
        pl.BlockSpec((1, TQ, d_att), lambda b, qi: (b, qi, 0)),   # Q tile (merged heads)
        pl.BlockSpec((1, Sk, d_att), lambda b, qi: (b, 0, 0)),    # K resident across q-tiles
    ]
    inputs = [qp, kp]
    if write_out:
        in_specs.append(pl.BlockSpec((1, Sk, d_model), lambda b, qi: (b, 0, 0)))
        inputs.append(vp)
    if has_mask:
        # One (TQ, Sk) int8 mask DMA per (batch, q-tile) — reused for all heads.
        in_specs.append(pl.BlockSpec((1, TQ, Sk), lambda b, qi: (b, qi, 0)))
        inputs.append(mask)

    out_shapes, out_specs, names = [], [], []
    if write_out:
        # Merged-head output written directly -> no merge transpose; last dim
        # is d_model (>=128 typically) so the store/writeback is lane-dense.
        out_shapes.append(jax.ShapeDtypeStruct((B, Sq, d_model), dtype))
        out_specs.append(pl.BlockSpec((1, TQ, d_model), lambda b, qi: (b, qi, 0)))
        names.append("out")
    if write_attn:
        out_shapes.append(jax.ShapeDtypeStruct((B, n_heads, Sq, Sk), attn_out_dtype))
        out_specs.append(pl.BlockSpec((1, n_heads, TQ, Sk), lambda b, qi: (b, 0, qi, 0)))
        names.append("attn")

    kernel = functools.partial(
        _sdpa_kernel, scale=1.0 / math.sqrt(d_head_k),
        n_heads=n_heads, d_head_k=d_head_k, d_head_v=d_head_v,
        has_mask=has_mask, write_out=write_out, write_attn=write_attn,
        mxu_dtype=mxu_dtype)

    outs = pl.pallas_call(
        kernel,
        out_shape=tuple(out_shapes),
        grid_spec=pltpu.PrefetchScalarGridSpec(
            num_scalar_prefetch=0,
            grid=grid,
            in_specs=in_specs,
            out_specs=out_specs,
        ),
        compiler_params=pltpu.CompilerParams(
            # Batch axis split across TensorCores; q-tile axis "arbitrary" so
            # each core keeps its resident K/V block across q-tiles.
            dimension_semantics=("parallel", "arbitrary"),
            vmem_limit_bytes=vmem_limit,
        ),
    )(*inputs)
    return dict(zip(names, outs))


# --------------------------------------------------------------------------
# Linear (nn.Linear equivalent): tiled matmul with f32 VMEM accumulator.
# --------------------------------------------------------------------------
def _linear_kernel(x_ref, w_ref, b_ref, o_ref, acc_ref):
    @pl.when(pl.program_id(2) == 0)
    def _():
        acc_ref[...] = jnp.zeros_like(acc_ref)

    acc_ref[...] += jnp.dot(x_ref[...], w_ref[...],
                            preferred_element_type=jnp.float32)

    @pl.when(pl.program_id(2) == pl.num_programs(2) - 1)
    def _():
        o_ref[...] = (acc_ref[...] + b_ref[...].astype(jnp.float32)
                      ).astype(o_ref.dtype)


def _pick_linear_tiles(n_rows, d_in, d_out):
    tm = n_rows if n_rows <= 512 else 512
    # K tiles must divide d_in exactly (padding along K would add garbage).
    tk = d_in
    if d_in > 1024:
        for t in range(512, 127, -128):
            if d_in % t == 0:
                tk = t
                break
    # N-axis padding is harmless (padded output columns are dropped).
    tn = d_out if d_out <= 1024 else 512
    return tm, tk, tn


def _pallas_linear(x, w, b):
    """x:(N,d_in) @ w:(d_in,d_out) + b:(d_out,) — row/N/K-tiled matmul."""
    N, d_in = x.shape
    d_out = w.shape[1]
    tm, tk, tn = _pick_linear_tiles(N, d_in, d_out)
    grid = (pl.cdiv(N, tm), pl.cdiv(d_out, tn), d_in // tk)
    return pl.pallas_call(
        _linear_kernel,
        out_shape=jax.ShapeDtypeStruct((N, d_out), x.dtype),
        grid_spec=pltpu.PrefetchScalarGridSpec(
            num_scalar_prefetch=0,
            grid=grid,
            in_specs=[
                pl.BlockSpec((tm, tk), lambda i, j, kk: (i, kk)),
                pl.BlockSpec((tk, tn), lambda i, j, kk: (kk, j)),
                pl.BlockSpec((1, tn), lambda i, j, kk: (0, j)),
            ],
            out_specs=pl.BlockSpec((tm, tn), lambda i, j, kk: (i, j)),
            scratch_shapes=[pltpu.VMEM((tm, tn), jnp.float32)],
        ),
        compiler_params=pltpu.CompilerParams(
            dimension_semantics=("parallel", "parallel", "arbitrary"),
        ),
    )(x, w, b.reshape(1, d_out))


# --------------------------------------------------------------------------
# MultiHeadAttention.forward
# --------------------------------------------------------------------------
def init_mha_params(key, d_model, d_att, dtype=jnp.float32):
    ks = jax.random.split(key, 8)

    def lin(kw, kb, d_in, d_out):
        w = (jax.random.normal(kw, (d_in, d_out)) / math.sqrt(d_in)).astype(dtype)
        b = (0.01 * jax.random.normal(kb, (d_out,))).astype(dtype)
        return w, b

    wq, bq = lin(ks[0], ks[1], d_model, d_att)
    wk, bk = lin(ks[2], ks[3], d_model, d_att)
    wv, bv = lin(ks[4], ks[5], d_model, d_model)
    wo, bo = lin(ks[6], ks[7], d_model, d_model)
    return {"wq": wq, "bq": bq, "wk": wk, "bk": bk,
            "wv": wv, "bv": bv, "wo": wo, "bo": bo}


@functools.partial(
    jax.jit,
    static_argnames=("n_heads", "output_mode", "transform_inputs", "tq_max",
                     "use_bf16_matmul", "attn_dtype"))
def multi_head_attention(params, q, k, v, mask=None, *, n_heads,
                         output_mode=AttentionOutputMode.OUTPUT_ONLY,
                         transform_inputs=True, tq_max=None,
                         use_bf16_matmul=True, attn_dtype=None):
    """q,k,v: (B, S, d_model); mask: (B, Sq, Sk) (nonzero = keep) or None."""
    B, Sq, _ = q.shape
    Sk = k.shape[1]
    write_out = output_mode != AttentionOutputMode.WEIGHTS_ONLY

    if transform_inputs:
        qp = _pallas_linear(q.reshape(B * Sq, -1), params["wq"], params["bq"]
                            ).reshape(B, Sq, -1)
        kp = _pallas_linear(k.reshape(B * Sk, -1), params["wk"], params["bk"]
                            ).reshape(B, Sk, -1)
        if write_out:
            vp = _pallas_linear(v.reshape(B * Sk, -1), params["wv"], params["bv"]
                                ).reshape(B, Sk, -1)
        else:
            vp = v   # V is never loaded by the kernel in WEIGHTS_ONLY mode
    else:
        qp, kp, vp = q, k, v

    mask_i8 = None
    if mask is not None:
        m = mask
        if m.ndim == 4:
            if m.shape[1] != 1:
                # TODO(synk): genuine per-head (B,H,Sq,Sk) masks would need a
                # head-indexed mask BlockSpec; the reference module only ever
                # broadcasts a (B,Sq,Sk) mask over heads.
                raise NotImplementedError("per-head masks are not supported")
            m = m[:, 0]
        mask_i8 = m.astype(jnp.int8)   # compact 1-byte mask in HBM

    # TODO(synk): BaseSingleHeadAttention is abstract (pass_pre returns {});
    #             the canonical scaled-dot-product attention is implemented.
    res = _sdpa_pallas(qp, kp, vp, mask_i8, n_heads=n_heads,
                       output_mode=output_mode, tq_max=tq_max,
                       use_bf16_matmul=use_bf16_matmul, attn_dtype=attn_dtype)

    if output_mode == AttentionOutputMode.WEIGHTS_ONLY:
        return res["attn"]

    out = res["out"]   # already (B, Sq, d_model): heads merged inside the kernel
    if transform_inputs:
        out = _pallas_linear(out.reshape(B * Sq, -1), params["wo"], params["bo"]
                             ).reshape(B, Sq, -1)
    # TODO(synk): dropout is identity at inference; train-mode dropout would
    #             use pltpu.prng_seed / pltpu.stateful_bernoulli.

    if output_mode == AttentionOutputMode.OUTPUT_ONLY:
        return out
    return out, res["attn"]


# --------------------------------------------------------------------------
# Pure-JAX reference for correctness checking.
# --------------------------------------------------------------------------
def _reference_forward(params, q, k, v, mask, n_heads):
    qp = q @ params["wq"] + params["bq"]
    kp = k @ params["wk"] + params["bk"]
    vp = v @ params["wv"] + params["bv"]
    B, Sq, d_att = qp.shape
    Sk = kp.shape[1]
    dk = d_att // n_heads
    dv = vp.shape[-1] // n_heads
    qh = qp.reshape(B, Sq, n_heads, dk).transpose(0, 2, 1, 3)
    kh = kp.reshape(B, Sk, n_heads, dk).transpose(0, 2, 1, 3)
    vh = vp.reshape(B, Sk, n_heads, dv).transpose(0, 2, 1, 3)
    scores = jnp.einsum("bhqd,bhkd->bhqk", qh, kh) / math.sqrt(dk)
    if mask is not None:
        scores = jnp.where(mask[:, None, :, :] != 0, scores, -1e30)
    attn = jax.nn.softmax(scores, axis=-1)
    outh = jnp.einsum("bhqk,bhkd->bhqd", attn, vh)
    out = outh.transpose(0, 2, 1, 3).reshape(B, Sq, vp.shape[-1])
    out = out @ params["wo"] + params["bo"]
    return out, attn


if __name__ == "__main__":
    key = jax.random.PRNGKey(0)
    kparam, kq, kk, kv, km = jax.random.split(key, 5)

    B, S, d_model, d_att, n_heads = 2, 8, 32, 32, 4
    dtype = jnp.float32

    params = init_mha_params(kparam, d_model, d_att, dtype)
    q = jax.random.normal(kq, (B, S, d_model), dtype)
    k = jax.random.normal(kk, (B, S, d_model), dtype)
    v = jax.random.normal(kv, (B, S, d_model), dtype)
    # Random 0/1 mask; keep the diagonal so no row is fully masked.
    mask = (jax.random.uniform(km, (B, S, S)) > 0.3).astype(jnp.int8)
    mask = jnp.maximum(mask, jnp.eye(S, dtype=jnp.int8)[None])

    ref_out, ref_attn = _reference_forward(params, q, k, v, mask, n_heads)
    ref_out_nm, _ = _reference_forward(params, q, k, v, None, n_heads)

    # ---- exact-precision (f32 MXU operands) functional checks --------------
    out = multi_head_attention(params, q, k, v, mask, n_heads=n_heads,
                               output_mode=AttentionOutputMode.OUTPUT_ONLY,
                               use_bf16_matmul=False)
    out = jax.block_until_ready(out)

    out2, attn2 = multi_head_attention(
        params, q, k, v, mask, n_heads=n_heads,
        output_mode=AttentionOutputMode.OUTPUT_AND_WEIGHTS,
        use_bf16_matmul=False)
    out2, attn2 = jax.block_until_ready((out2, attn2))

    attn3 = multi_head_attention(params, q, k, v, mask, n_heads=n_heads,
                                 output_mode=AttentionOutputMode.WEIGHTS_ONLY,
                                 use_bf16_matmul=False)
    attn3 = jax.block_until_ready(attn3)

    out4 = multi_head_attention(params, q, k, v, None, n_heads=n_heads,
                                output_mode=AttentionOutputMode.OUTPUT_ONLY,
                                use_bf16_matmul=False)
    out4 = jax.block_until_ready(out4)

    # ---- default performance path (bf16 MXU operands, f32 accumulation) ----
    out_bf = multi_head_attention(params, q, k, v, mask, n_heads=n_heads,
                                  output_mode=AttentionOutputMode.OUTPUT_ONLY)
    out_bf = jax.block_until_ready(out_bf)

    tol = dict(atol=1e-2, rtol=1e-2)
    assert out.shape == (B, S, d_model)
    assert attn2.shape == (B, n_heads, S, S)
    assert jnp.allclose(out, ref_out, **tol)
    assert jnp.allclose(out2, ref_out, **tol)
    assert jnp.allclose(attn2, ref_attn, **tol)
    assert jnp.allclose(attn3, ref_attn, **tol)
    assert jnp.allclose(out4, ref_out_nm, **tol)
    assert jnp.allclose(out_bf, ref_out, atol=5e-2, rtol=5e-2)

    print("KERNEL_OK")
</pallas_src>

<mosaic_0001>
module attributes {stable_mosaic.version = 11 : i64} {
  func.func @_linear_kernel(%arg0: i32, %arg1: i32, %arg2: i32, %arg3: memref<16x32xf32, #tpu.memory_space<vmem>>, %arg4: memref<32x32xf32, #tpu.memory_space<vmem>>, %arg5: memref<1x32xf32, #tpu.memory_space<vmem>>, %arg6: memref<16x32xf32, #tpu.memory_space<vmem>>, %arg7: memref<16x32xf32, #tpu.memory_space<vmem>>) attributes {dimension_semantics = [#tpu.dimension_semantics<parallel>, #tpu.dimension_semantics<parallel>, #tpu.dimension_semantics<arbitrary>], iteration_bounds = array<i64: 1, 1, 1>, scalar_prefetch = 0 : i64, scratch_operands = 1 : i64, tpu.core_type = #tpu.core_type<tc>, window_params = [{transform_indices = @transform_0, window_bounds = array<i64: 16, 32>}, {transform_indices = @transform_1, window_bounds = array<i64: 32, 32>}, {transform_indices = @transform_2, window_bounds = array<i64: 1, 32>}, {transform_indices = @transform_3, window_bounds = array<i64: 16, 32>}]} {
    %c0_i32 = arith.constant 0 : i32
    %0 = arith.cmpi eq, %arg2, %c0_i32 : i32
    %1 = arith.extui %0 : i1 to i32
    %c0_i32_0 = arith.constant 0 : i32
    %2 = arith.cmpi ne, %1, %c0_i32_0 : i32
    scf.if %2 {
      %cst_10 = arith.constant 0.000000e+00 : f32
      %12 = vector.broadcast %cst_10 : f32 to vector<16x32xf32>
      %c0_11 = arith.constant 0 : index
      %c0_12 = arith.constant 0 : index
      %13 = vector.load %arg7[%c0_11, %c0_12] : memref<16x32xf32, #tpu.memory_space<vmem>>, vector<16x32xf32>
      tpu.vector_store %arg7[%c0_11, %c0_12], %12 {strides = array<i32>} : memref<16x32xf32, #tpu.memory_space<vmem>>, vector<16x32xf32>,
    } else {
    }
    %c0 = arith.constant 0 : index
    %c0_1 = arith.constant 0 : index
    %3 = vector.load %arg7[%c0, %c0_1] : memref<16x32xf32, #tpu.memory_space<vmem>>, vector<16x32xf32>
    %c0_2 = arith.constant 0 : index
    %c0_3 = arith.constant 0 : index
    %4 = vector.load %arg3[%c0_2, %c0_3] : memref<16x32xf32, #tpu.memory_space<vmem>>, vector<16x32xf32>
    %c0_4 = arith.constant 0 : index
    %c0_5 = arith.constant 0 : index
    %5 = vector.load %arg4[%c0_4, %c0_5] : memref<32x32xf32, #tpu.memory_space<vmem>>, vector<32x32xf32>
    %cst = arith.constant dense<0.000000e+00> : vector<16x32xf32>
    %6 = tpu.matmul %4, %5, %cst {dimension_numbers = #tpu.dot_dimension_numbers<[1], [0], [0], [1], [0, 0, 1, 1], [], []>} : vector<16x32xf32>, vector<32x32xf32>, vector<16x32xf32> -> vector<16x32xf32>
    %7 = arith.addf %3, %6 : vector<16x32xf32>
    %c0_6 = arith.constant 0 : index
    %c0_7 = arith.constant 0 : index
    %8 = vector.load %arg7[%c0_6, %c0_7] : memref<16x32xf32, #tpu.memory_space<vmem>>, vector<16x32xf32>
    tpu.vector_store %arg7[%c0_6, %c0_7], %7 {strides = array<i32>} : memref<16x32xf32, #tpu.memory_space<vmem>>, vector<16x32xf32>,
    %c0_i32_8 = arith.constant 0 : i32
    %9 = arith.cmpi eq, %arg2, %c0_i32_8 : i32
    %10 = arith.extui %9 : i1 to i32
    %c0_i32_9 = arith.constant 0 : i32
    %11 = arith.cmpi ne, %10, %c0_i32_9 : i32
    scf.if %11 {
      %c0_10 = arith.constant 0 : index
      %c0_11 = arith.constant 0 : index
      %12 = vector.load %arg7[%c0_10, %c0_11] : memref<16x32xf32, #tpu.memory_space<vmem>>, vector<16x32xf32>
      %c0_12 = arith.constant 0 : index
      %c0_13 = arith.constant 0 : index
      %13 = vector.load %arg5[%c0_12, %c0_13] : memref<1x32xf32, #tpu.memory_space<vmem>>, vector<1x32xf32>
      %14 = vector.broadcast %13 : vector<1x32xf32> to vector<16x32xf32>
      %15 = arith.addf %12, %14 : vector<16x32xf32>
      %c0_14 = arith.constant 0 : index
      %c0_15 = arith.constant 0 : index
      %16 = vector.load %arg6[%c0_14, %c0_15] : memref<16x32xf32, #tpu.memory_space<vmem>>, vector<16x32xf32>
      tpu.vector_store %arg6[%c0_14, %c0_15], %15 {strides = array<i32>} : memref<16x32xf32, #tpu.memory_space<vmem>>, vector<16x32xf32>,
    } else {
    }
    return
  }
  func.func @transform_0(%arg0: i32, %arg1: i32, %arg2: i32) -> (i32, i32) {
    %c0_i32 = arith.constant 0 : i32
    return %arg0, %arg2 : i32, i32
  }
  func.func @transform_1(%arg0: i32, %arg1: i32, %arg2: i32) -> (i32, i32) {
    %c0_i32 = arith.constant 0 : i32
    return %arg2, %arg1 : i32, i32
  }
  func.func @transform_2(%arg0: i32, %arg1: i32, %arg2: i32) -> (i32, i32) {
    %c0_i32 = arith.constant 0 : i32
    %c0_i32_0 = arith.constant 0 : i32
    return %c0_i32, %arg1 : i32, i32
  }
  func.func @transform_3(%arg0: i32, %arg1: i32, %arg2: i32) -> (i32, i32) {
    %c0_i32 = arith.constant 0 : i32
    return %arg0, %arg1 : i32, i32
  }
}

module attributes {stable_mosaic.version = 11 : i64} {
  func.func @_sdpa_kernel(%arg0: i32, %arg1: i32, %arg2: memref<1x8x32xf32, #tpu.memory_space<vmem>>, %arg3: memref<1x8x32xf32, #tpu.memory_space<vmem>>, %arg4: memref<1x8x32xf32, #tpu.memory_space<vmem>>, %arg5: memref<1x8x8xi8, #tpu.memory_space<vmem>>, %arg6: memref<1x8x32xf32, #tpu.memory_space<vmem>>) attributes {dimension_semantics = [#tpu.dimension_semantics<parallel>, #tpu.dimension_semantics<arbitrary>], iteration_bounds = array<i64: 2, 1>, scalar_prefetch = 0 : i64, scratch_operands = 0 : i64, tpu.core_type = #tpu.core_type<tc>, window_params = [{transform_indices = @transform_0, window_bounds = array<i64: 1, 8, 32>}, {transform_indices = @transform_1, window_bounds = array<i64: 1, 8, 32>}, {transform_indices = @transform_2, window_bounds = array<i64: 1, 8, 32>}, {transform_indices = @transform_3, window_bounds = array<i64: 1, 8, 8>}, {transform_indices = @transform_4, window_bounds = array<i64: 1, 8, 32>}]} {
    %c0 = arith.constant 0 : index
    %c0_0 = arith.constant 0 : index
    %c0_1 = arith.constant 0 : index
    %0 = vector.load %arg5[%c0, %c0_0, %c0_1] : memref<1x8x8xi8, #tpu.memory_space<vmem>>, vector<1x8x8xi8>
    %1 = vector.shape_cast %0 : vector<1x8x8xi8> to vector<8x8xi8>
    %c0_i8 = arith.constant 0 : i8
    %2 = vector.broadcast %c0_i8 : i8 to vector<8x8xi8>
    %3 = arith.cmpi ne, %1, %2 : vector<8x8xi8>
    %c0_2 = arith.constant 0 : index
    %c0_3 = arith.constant 0 : index
    %c0_4 = arith.constant 0 : index
    %4 = vector.load %arg2[%c0_2, %c0_3, %c0_4] : memref<1x8x32xf32, #tpu.memory_space<vmem>>, vector<1x8x8xf32>
    %5 = vector.shape_cast %4 : vector<1x8x8xf32> to vector<8x8xf32>
    %cst = arith.constant 0.353553385 : f32
    %6 = vector.broadcast %cst : f32 to vector<8x8xf32>
    %7 = arith.mulf %5, %6 : vector<8x8xf32>
    %c0_5 = arith.constant 0 : index
    %c0_6 = arith.constant 0 : index
    %c0_7 = arith.constant 0 : index
    %8 = vector.load %arg3[%c0_5, %c0_6, %c0_7] : memref<1x8x32xf32, #tpu.memory_space<vmem>>, vector<1x8x8xf32>
    %9 = vector.shape_cast %8 : vector<1x8x8xf32> to vector<8x8xf32>
    %cst_8 = arith.constant dense<0.000000e+00> : vector<8x8xf32>
    %10 = tpu.matmul %7, %9, %cst_8 {dimension_numbers = #tpu.dot_dimension_numbers<[1], [1], [0], [0], [0, 0, 1, 0], [], []>} : vector<8x8xf32>, vector<8x8xf32>, vector<8x8xf32> -> vector<8x8xf32>
    %cst_9 = arith.constant -1.000000e+30 : f32
    %11 = vector.broadcast %cst_9 : f32 to vector<8x8xf32>
    %12 = arith.select %3, %10, %11 : vector<8x8xi1>, vector<8x8xf32>
    %cst_10 = arith.constant dense<0xFF800000> : vector<8xf32>
    %13 = vector.multi_reduction <maximumf>, %12, %cst_10 [1] : vector<8x8xf32> to vector<8xf32>
    %14 = vector.shape_cast %13 : vector<8xf32> to vector<8x1xf32>
    %15 = vector.broadcast %14 : vector<8x1xf32> to vector<8x8xf32>
    %16 = arith.subf %12, %15 : vector<8x8xf32>
    %17 = math.exp %16 : vector<8x8xf32>
    %cst_11 = arith.constant dense<0.000000e+00> : vector<8xf32>
    %18 = vector.multi_reduction <add>, %17, %cst_11 [1] : vector<8x8xf32> to vector<8xf32>
    %19 = vector.shape_cast %18 : vector<8xf32> to vector<8x1xf32>
    %20 = tpu.reciprocal %19 {approx = true} : vector<8x1xf32> -> vector<8x1xf32>
    %21 = vector.broadcast %20 : vector<8x1xf32> to vector<8x8xf32>
    %22 = arith.mulf %17, %21 : vector<8x8xf32>
    %c0_12 = arith.constant 0 : index
    %c0_13 = arith.constant 0 : index
    %c0_14 = arith.constant 0 : index
    %23 = vector.load %arg4[%c0_12, %c0_13, %c0_14] : memref<1x8x32xf32, #tpu.memory_space<vmem>>, vector<1x8x8xf32>
    %24 = vector.shape_cast %23 : vector<1x8x8xf32> to vector<8x8xf32>
    %cst_15 = arith.constant dense<0.000000e+00> : vector<8x8xf32>
    %25 = tpu.matmul %22, %24, %cst_15 {dimension_numbers = #tpu.dot_dimension_numbers<[1], [0], [0], [1], [0, 0, 1, 1], [], []>} : vector<8x8xf32>, vector<8x8xf32>, vector<8x8xf32> -> vector<8x8xf32>
    %c0_16 = arith.constant 0 : index
    %c0_17 = arith.constant 0 : index
    %c0_18 = arith.constant 0 : index
    %26 = vector.load %arg6[%c0_16, %c0_17, %c0_18] : memref<1x8x32xf32, #tpu.memory_space<vmem>>, vector<1x8x8xf32>
    %27 = vector.shape_cast %26 : vector<1x8x8xf32> to vector<8x8xf32>
    %28 = vector.shape_cast %25 : vector<8x8xf32> to vector<1x8x8xf32>
    tpu.vector_store %arg6[%c0_16, %c0_17, %c0_18], %28 {strides = array<i32>} : memref<1x8x32xf32, #tpu.memory_space<vmem>>, vector<1x8x8xf32>,
    %c0_19 = arith.constant 0 : index
    %c0_20 = arith.constant 0 : index
    %c8 = arith.constant 8 : index
    %29 = vector.load %arg2[%c0_19, %c0_20, %c8] : memref<1x8x32xf32, #tpu.memory_space<vmem>>, vector<1x8x8xf32>
    %30 = vector.shape_cast %29 : vector<1x8x8xf32> to vector<8x8xf32>
    %cst_21 = arith.constant 0.353553385 : f32
    %31 = vector.broadcast %cst_21 : f32 to vector<8x8xf32>
    %32 = arith.mulf %30, %31 : vector<8x8xf32>
    %c0_22 = arith.constant 0 : index
    %c0_23 = arith.constant 0 : index
    %c8_24 = arith.constant 8 : index
    %33 = vector.load %arg3[%c0_22, %c0_23, %c8_24] : memref<1x8x32xf32, #tpu.memory_space<vmem>>, vector<1x8x8xf32>
    %34 = vector.shape_cast %33 : vector<1x8x8xf32> to vector<8x8xf32>
    %cst_25 = arith.constant dense<0.000000e+00> : vector<8x8xf32>
    %35 = tpu.matmul %32, %34, %cst_25 {dimension_numbers = #tpu.dot_dimension_numbers<[1], [1], [0], [0], [0, 0, 1, 0], [], []>} : vector<8x8xf32>, vector<8x8xf32>, vector<8x8xf32> -> vector<8x8xf32>
    %cst_26 = arith.constant -1.000000e+30 : f32
    %36 = vector.broadcast %cst_26 : f32 to vector<8x8xf32>
    %37 = arith.select %3, %35, %36 : vector<8x8xi1>, vector<8x8xf32>
    %cst_27 = arith.constant dense<0xFF800000> : vector<8xf32>
    %38 = vector.multi_reduction <maximumf>, %37, %cst_27 [1] : vector<8x8xf32> to vector<8xf32>
    %39 = vector.shape_cast %38 : vector<8xf32> to vector<8x1xf32>
    %40 = vector.broadcast %39 : vector<8x1xf32> to vector<8x8xf32>
    %41 = arith.subf %37, %40 : vector<8x8xf32>
    %42 = math.exp %41 : vector<8x8xf32>
    %cst_28 = arith.constant dense<0.000000e+00> : vector<8xf32>
    %43 = vector.multi_reduction <add>, %42, %cst_28 [1] : vector<8x8xf32> to vector<8xf32>
    %44 = vector.shape_cast %43 : vector<8xf32> to vector<8x1xf32>
    %45 = tpu.reciprocal %44 {approx = true} : vector<8x1xf32> -> vector<8x1xf32>
    %46 = vector.broadcast %45 : vector<8x1xf32> to vector<8x8xf32>
    %47 = arith.mulf %42, %46 : vector<8x8xf32>
    %c0_29 = arith.constant 0 : index
    %c0_30 = arith.constant 0 : index
    %c8_31 = arith.constant 8 : index
    %48 = vector.load %arg4[%c0_29, %c0_30, %c8_31] : memref<1x8x32xf32, #tpu.memory_space<vmem>>, vector<1x8x8xf32>
    %49 = vector.shape_cast %48 : vector<1x8x8xf32> to vector<8x8xf32>
    %cst_32 = arith.constant dense<0.000000e+00> : vector<8x8xf32>
    %50 = tpu.matmul %47, %49, %cst_32 {dimension_numbers = #tpu.dot_dimension_numbers<[1], [0], [0], [1], [0, 0, 1, 1], [], []>} : vector<8x8xf32>, vector<8x8xf32>, vector<8x8xf32> -> vector<8x8xf32>
    %c0_33 = arith.constant 0 : index
    %c0_34 = arith.constant 0 : index
    %c8_35 = arith.constant 8 : index
    %51 = vector.load %arg6[%c0_33, %c0_34, %c8_35] : memref<1x8x32xf32, #tpu.memory_space<vmem>>, vector<1x8x8xf32>
    %52 = vector.shape_cast %51 : vector<1x8x8xf32> to vector<8x8xf32>
    %53 = vector.shape_cast %50 : vector<8x8xf32> to vector<1x8x8xf32>
    tpu.vector_store %arg6[%c0_33, %c0_34, %c8_35], %53 {strides = array<i32>} : memref<1x8x32xf32, #tpu.memory_space<vmem>>, vector<1x8x8xf32>,
    %c0_36 = arith.constant 0 : index
    %c0_37 = arith.constant 0 : index
    %c16 = arith.constant 16 : index
    %54 = vector.load %arg2[%c0_36, %c0_37, %c16] : memref<1x8x32xf32, #tpu.memory_space<vmem>>, vector<1x8x8xf32>
    %55 = vector.shape_cast %54 : vector<1x8x8xf32> to vector<8x8xf32>
    %cst_38 = arith.constant 0.353553385 : f32
    %56 = vector.broadcast %cst_38 : f32 to vector<8x8xf32>
    %57 = arith.mulf %55, %56 : vector<8x8xf32>
    %c0_39 = arith.constant 0 : index
    %c0_40 = arith.constant 0 : index
    %c16_41 = arith.constant 16 : index
    %58 = vector.load %arg3[%c0_39, %c0_40, %c16_41] : memref<1x8x32xf32, #tpu.memory_space<vmem>>, vector<1x8x8xf32>
    %59 = vector.shape_cast %58 : vector<1x8x8xf32> to vector<8x8xf32>
    %cst_42 = arith.constant dense<0.000000e+00> : vector<8x8xf32>
    %60 = tpu.matmul %57, %59, %cst_42 {dimension_numbers = #tpu.dot_dimension_numbers<[1], [1], [0], [0], [0, 0, 1, 0], [], []>} : vector<8x8xf32>, vector<8x8xf32>, vector<8x8xf32> -> vector<8x8xf32>
    %cst_43 = arith.constant -1.000000e+30 : f32
    %61 = vector.broadcast %cst_43 : f32 to vector<8x8xf32>
    %62 = arith.select %3, %60, %61 : vector<8x8xi1>, vector<8x8xf32>
    %cst_44 = arith.constant dense<0xFF800000> : vector<8xf32>
    %63 = vector.multi_reduction <maximumf>, %62, %cst_44 [1] : vector<8x8xf32> to vector<8xf32>
    %64 = vector.shape_cast %63 : vector<8xf32> to vector<8x1xf32>
    %65 = vector.broadcast %64 : vector<8x1xf32> to vector<8x8xf32>
    %66 = arith.subf %62, %65 : vector<8x8xf32>
    %67 = math.exp %66 : vector<8x8xf32>
    %cst_45 = arith.constant dense<0.000000e+00> : vector<8xf32>
    %68 = vector.multi_reduction <add>, %67, %cst_45 [1] : vector<8x8xf32> to vector<8xf32>
    %69 = vector.shape_cast %68 : vector<8xf32> to vector<8x1xf32>
    %70 = tpu.reciprocal %69 {approx = true} : vector<8x1xf32> -> vector<8x1xf32>
    %71 = vector.broadcast %70 : vector<8x1xf32> to vector<8x8xf32>
    %72 = arith.mulf %67, %71 : vector<8x8xf32>
    %c0_46 = arith.constant 0 : index
    %c0_47 = arith.constant 0 : index
    %c16_48 = arith.constant 16 : index
    %73 = vector.load %arg4[%c0_46, %c0_47, %c16_48] : memref<1x8x32xf32, #tpu.memory_space<vmem>>, vector<1x8x8xf32>
    %74 = vector.shape_cast %73 : vector<1x8x8xf32> to vector<8x8xf32>
    %cst_49 = arith.constant dense<0.000000e+00> : vector<8x8xf32>
    %75 = tpu.matmul %72, %74, %cst_49 {dimension_numbers = #tpu.dot_dimension_numbers<[1], [0], [0], [1], [0, 0, 1, 1], [], []>} : vector<8x8xf32>, vector<8x8xf32>, vector<8x8xf32> -> vector<8x8xf32>
    %c0_50 = arith.constant 0 : index
    %c0_51 = arith.constant 0 : index
    %c16_52 = arith.constant 16 : index
    %76 = vector.load %arg6[%c0_50, %c0_51, %c16_52] : memref<1x8x32xf32, #tpu.memory_space<vmem>>, vector<1x8x8xf32>
    %77 = vector.shape_cast %76 : vector<1x8x8xf32> to vector<8x8xf32>
    %78 = vector.shape_cast %75 : vector<8x8xf32> to vector<1x8x8xf32>
    tpu.vector_store %arg6[%c0_50, %c0_51, %c16_52], %78 {strides = array<i32>} : memref<1x8x32xf32, #tpu.memory_space<vmem>>, vector<1x8x8xf32>,
    %c0_53 = arith.constant 0 : index
    %c0_54 = arith.constant 0 : index
    %c24 = arith.constant 24 : index
    %79 = vector.load %arg2[%c0_53, %c0_54, %c24] : memref<1x8x32xf32, #tpu.memory_space<vmem>>, vector<1x8x8xf32>
    %80 = vector.shape_cast %79 : vector<1x8x8xf32> to vector<8x8xf32>
    %cst_55 = arith.constant 0.353553385 : f32
    %81 = vector.broadcast %cst_55 : f32 to vector<8x8xf32>
    %82 = arith.mulf %80, %81 : vector<8x8xf32>
    %c0_56 = arith.constant 0 : index
    %c0_57 = arith.constant 0 : index
    %c24_58 = arith.constant 24 : index
    %83 = vector.load %arg3[%c0_56, %c0_57, %c24_58] : memref<1x8x32xf32, #tpu.memory_space<vmem>>, vector<1x8x8xf32>
    %84 = vector.shape_cast %83 : vector<1x8x8xf32> to vector<8x8xf32>
    %cst_59 = arith.constant dense<0.000000e+00> : vector<8x8xf32>
    %85 = tpu.matmul %82, %84, %cst_59 {dimension_numbers = #tpu.dot_dimension_numbers<[1], [1], [0], [0], [0, 0, 1, 0], [], []>} : vector<8x8xf32>, vector<8x8xf32>, vector<8x8xf32> -> vector<8x8xf32>
    %cst_60 = arith.constant -1.000000e+30 : f32
    %86 = vector.broadcast %cst_60 : f32 to vector<8x8xf32>
    %87 = arith.select %3, %85, %86 : vector<8x8xi1>, vector<8x8xf32>
    %cst_61 = arith.constant dense<0xFF800000> : vector<8xf32>
    %88 = vector.multi_reduction <maximumf>, %87, %cst_61 [1] : vector<8x8xf32> to vector<8xf32>
    %89 = vector.shape_cast %88 : vector<8xf32> to vector<8x1xf32>
    %90 = vector.broadcast %89 : vector<8x1xf32> to vector<8x8xf32>
    %91 = arith.subf %87, %90 : vector<8x8xf32>
    %92 = math.exp %91 : vector<8x8xf32>
    %cst_62 = arith.constant dense<0.000000e+00> : vector<8xf32>
    %93 = vector.multi_reduction <add>, %92, %cst_62 [1] : vector<8x8xf32> to vector<8xf32>
    %94 = vector.shape_cast %93 : vector<8xf32> to vector<8x1xf32>
    %95 = tpu.reciprocal %94 {approx = true} : vector<8x1xf32> -> vector<8x1xf32>
    %96 = vector.broadcast %95 : vector<8x1xf32> to vector<8x8xf32>
    %97 = arith.mulf %92, %96 : vector<8x8xf32>
    %c0_63 = arith.constant 0 : index
    %c0_64 = arith.constant 0 : index
    %c24_65 = arith.constant 24 : index
    %98 = vector.load %arg4[%c0_63, %c0_64, %c24_65] : memref<1x8x32xf32, #tpu.memory_space<vmem>>, vector<1x8x8xf32>
    %99 = vector.shape_cast %98 : vector<1x8x8xf32> to vector<8x8xf32>
    %cst_66 = arith.constant dense<0.000000e+00> : vector<8x8xf32>
    %100 = tpu.matmul %97, %99, %cst_66 {dimension_numbers = #tpu.dot_dimension_numbers<[1], [0], [0], [1], [0, 0, 1, 1], [], []>} : vector<8x8xf32>, vector<8x8xf32>, vector<8x8xf32> -> vector<8x8xf32>
    %c0_67 = arith.constant 0 : index
    %c0_68 = arith.constant 0 : index
    %c24_69 = arith.constant 24 : index
    %101 = vector.load %arg6[%c0_67, %c0_68, %c24_69] : memref<1x8x32xf32, #tpu.memory_space<vmem>>, vector<1x8x8xf32>
    %102 = vector.shape_cast %101 : vector<1x8x8xf32> to vector<8x8xf32>
    %103 = vector.shape_cast %100 : vector<8x8xf32> to vector<1x8x8xf32>
    tpu.vector_store %arg6[%c0_67, %c0_68, %c24_69], %103 {strides = array<i32>} : memref<1x8x32xf32, #tpu.memory_space<vmem>>, vector<1x8x8xf32>,
    return
  }
  func.func @transform_0(%arg0: i32, %arg1: i32) -> (i32, i32, i32) {
    %c0_i32 = arith.constant 0 : i32
    %c0_i32_0 = arith.constant 0 : i32
    return %arg0, %arg1, %c0_i32 : i32, i32, i32
  }
  func.func @transform_1(%arg0: i32, %arg1: i32) -> (i32, i32, i32) {
    %c0_i32 = arith.constant 0 : i32
    %c0_i32_0 = arith.constant 0 : i32
    %c0_i32_1 = arith.constant 0 : i32
    return %arg0, %c0_i32, %c0_i32_0 : i32, i32, i32
  }
  func.func @transform_2(%arg0: i32, %arg1: i32) -> (i32, i32, i32) {
    %c0_i32 = arith.constant 0 : i32
    %c0_i32_0 = arith.constant 0 : i32
    %c0_i32_1 = arith.constant 0 : i32
    return %arg0, %c0_i32, %c0_i32_0 : i32, i32, i32
  }
  func.func @transform_3(%arg0: i32, %arg1: i32) -> (i32, i32, i32) {
    %c0_i32 = arith.constant 0 : i32
    %c0_i32_0 = arith.constant 0 : i32
    return %arg0, %arg1, %c0_i32 : i32, i32, i32
  }
  func.func @transform_4(%arg0: i32, %arg1: i32) -> (i32, i32, i32) {
    %c0_i32 = arith.constant 0 : i32
    %c0_i32_0 = arith.constant 0 : i32
    return %arg0, %arg1, %c0_i32 : i32, i32, i32
  }
}

module attributes {stable_mosaic.version = 11 : i64} {
  func.func @_linear_kernel(%arg0: i32, %arg1: i32, %arg2: i32, %arg3: memref<16x32xf32, #tpu.memory_space<vmem>>, %arg4: memref<32x32xf32, #tpu.memory_space<vmem>>, %arg5: memref<1x32xf32, #tpu.memory_space<vmem>>, %arg6: memref<16x32xf32, #tpu.memory_space<vmem>>, %arg7: memref<16x32xf32, #tpu.memory_space<vmem>>) attributes {dimension_semantics = [#tpu.dimension_semantics<parallel>, #tpu.dimension_semantics<parallel>, #tpu.dimension_semantics<arbitrary>], iteration_bounds = array<i64: 1, 1, 1>, scalar_prefetch = 0 : i64, scratch_operands = 1 : i64, tpu.core_type = #tpu.core_type<tc>, window_params = [{transform_indices = @transform_0, window_bounds = array<i64: 16, 32>}, {transform_indices = @transform_1, window_bounds = array<i64: 32, 32>}, {transform_indices = @transform_2, window_bounds = array<i64: 1, 32>}, {transform_indices = @transform_3, window_bounds = array<i64: 16, 32>}]} {
    %c0_i32 = arith.constant 0 : i32
    %0 = arith.cmpi eq, %arg2, %c0_i32 : i32
    %1 = arith.extui %0 : i1 to i32
    %c0_i32_0 = arith.constant 0 : i32
    %2 = arith.cmpi ne, %1, %c0_i32_0 : i32
    scf.if %2 {
      %cst_10 = arith.constant 0.000000e+00 : f32
      %12 = vector.broadcast %cst_10 : f32 to vector<16x32xf32>
      %c0_11 = arith.constant 0 : index
      %c0_12 = arith.constant 0 : index
      %13 = vector.load %arg7[%c0_11, %c0_12] : memref<16x32xf32, #tpu.memory_space<vmem>>, vector<16x32xf32>
      tpu.vector_store %arg7[%c0_11, %c0_12], %12 {strides = array<i32>} : memref<16x32xf32, #tpu.memory_space<vmem>>, vector<16x32xf32>,
    } else {
    }
    %c0 = arith.constant 0 : index
    %c0_1 = arith.constant 0 : index
    %3 = vector.load %arg7[%c0, %c0_1] : memref<16x32xf32, #tpu.memory_space<vmem>>, vector<16x32xf32>
    %c0_2 = arith.constant 0 : index
    %c0_3 = arith.constant 0 : index
    %4 = vector.load %arg3[%c0_2, %c0_3] : memref<16x32xf32, #tpu.memory_space<vmem>>, vector<16x32xf32>
    %c0_4 = arith.constant 0 : index
    %c0_5 = arith.constant 0 : index
    %5 = vector.load %arg4[%c0_4, %c0_5] : memref<32x32xf32, #tpu.memory_space<vmem>>, vector<32x32xf32>
    %cst = arith.constant dense<0.000000e+00> : vector<16x32xf32>
    %6 = tpu.matmul %4, %5, %cst {dimension_numbers = #tpu.dot_dimension_numbers<[1], [0], [0], [1], [0, 0, 1, 1], [], []>} : vector<16x32xf32>, vector<32x32xf32>, vector<16x32xf32> -> vector<16x32xf32>
    %7 = arith.addf %3, %6 : vector<16x32xf32>
    %c0_6 = arith.constant 0 : index
    %c0_7 = arith.constant 0 : index
    %8 = vector.load %arg7[%c0_6, %c0_7] : memref<16x32xf32, #tpu.memory_space<vmem>>, vector<16x32xf32>
    tpu.vector_store %arg7[%c0_6, %c0_7], %7 {strides = array<i32>} : memref<16x32xf32, #tpu.memory_space<vmem>>, vector<16x32xf32>,
    %c0_i32_8 = arith.constant 0 : i32
    %9 = arith.cmpi eq, %arg2, %c0_i32_8 : i32
    %10 = arith.extui %9 : i1 to i32
    %c0_i32_9 = arith.constant 0 : i32
    %11 = arith.cmpi ne, %10, %c0_i32_9 : i32
    scf.if %11 {
      %c0_10 = arith.constant 0 : index
      %c0_11 = arith.constant 0 : index
      %12 = vector.load %arg7[%c0_10, %c0_11] : memref<16x32xf32, #tpu.memory_space<vmem>>, vector<16x32xf32>
      %c0_12 = arith.constant 0 : index
      %c0_13 = arith.constant 0 : index
      %13 = vector.load %arg5[%c0_12, %c0_13] : memref<1x32xf32, #tpu.memory_space<vmem>>, vector<1x32xf32>
      %14 = vector.broadcast %13 : vector<1x32xf32> to vector<16x32xf32>
      %15 = arith.addf %12, %14 : vector<16x32xf32>
      %c0_14 = arith.constant 0 : index
      %c0_15 = arith.constant 0 : index
      %16 = vector.load %arg6[%c0_14, %c0_15] : memref<16x32xf32, #tpu.memory_space<vmem>>, vector<16x32xf32>
      tpu.vector_store %arg6[%c0_14, %c0_15], %15 {strides = array<i32>} : memref<16x32xf32, #tpu.memory_space<vmem>>, vector<16x32xf32>,
    } else {
    }
    return
  }
  func.func @transform_0(%arg0: i32, %arg1: i32, %arg2: i32) -> (i32, i32) {
    %c0_i32 = arith.constant 0 : i32
    return %arg0, %arg2 : i32, i32
  }
  func.func @transform_1(%arg0: i32, %arg1: i32, %arg2: i32) -> (i32, i32) {
    %c0_i32 = arith.constant 0 : i32
    return %arg2, %arg1 : i32, i32
  }
  func.func @transform_2(%arg0: i32, %arg1: i32, %arg2: i32) -> (i32, i32) {
    %c0_i32 = arith.constant 0 : i32
    %c0_i32_0 = arith.constant 0 : i32
    return %c0_i32, %arg1 : i32, i32
  }
  func.func @transform_3(%arg0: i32, %arg1: i32, %arg2: i32) -> (i32, i32) {
    %c0_i32 = arith.constant 0 : i32
    return %arg0, %arg1 : i32, i32
  }
}

</mosaic_0001>

<bundles_post_ra>
// kernel: multi_head_attention.9
= control target key start
LH: loop header
LB: loop body
LE: loop exit
PB: predicated region body
PF: predicated region fallthrough
CT: control target
= control target key end

     0   :  { %vm19_vm0 = vcmask 261120   ;;  %v204_v6 = vmov 0.0   ;;  %s269_s0 = inlined_call_operand.vmem [shape: f32[16,32], index: 0, kind: input, shape index: {}]   ;;  %s270_s1 = inlined_call_operand.vmem [shape: f32[32,32], index: 1, kind: input, shape index: {}]   ;;  %s271_s2 = inlined_call_operand.vmem [shape: f32[1,32], index: 2, kind: input, shape index: {}]   ;;  %s272_s3 = inlined_call_operand.hbm [shape: f32[16,32], index: 3, kind: output, shape index: {}]  }
   0x1   :  { %v26_v0 = vld [vmem:[%s270_s1] sm:$0xff]  ;;  %v27_v1 = vld [vmem:[%s270_s1 + $0x8] sm:$0xff]  ;;  %v28_v2 = vld [vmem:[%s270_s1 + $0x10] sm:$0xff]  ;;  %21 = vst.msk [vmem:[#allocation2 + $0x8] sm:$0xff] %vm19_vm0, %v204_v6 }
   0x2   :  { %v168_v3 = vpack.c.bf16 %v27_v1, %v26_v0  ;;  %v29_v4 = vld [vmem:[%s270_s1 + $0x18] sm:$0xff]  ;;  %v24_v5 = vld [vmem:[%s269_s0] sm:$0xff]  ;;  %20 = vst.msk [vmem:[#allocation2] sm:$0xff] %vm19_vm0, %v204_v6 }
   0x3   :  { %v172_v7 = vpack.c.bf16 %v29_v4, %v28_v2  ;;  %165 = vmatprep.mubr.msk.f32.mxu0 %vm19_vm0, %v24_v5 }
   0x4   :  { %8 = vsyncpa [#allocation4], 0  ;;  %169 = vmatprep.subr.bf16.mxu0 %v168_v3  ;;  %v25_v8 = vld [vmem:[%s269_s0 + $0x8] sm:$0xff]  ;;  %v150_v15 = vld [vmem:[%s271_s2] ss:$0 sm:$0xff]  ;;  %s205_s25 = smov [#allocation3]  }
   0x5   :  { %171 = vmatpush3.bf16.msra.mxu0 %v168_v3  ;;  %s137_s26 = sshll.u32 %s205_s25, 4  ;;  %s138_s26 = int_to_ptr.vmem [resolvable:$true] %s137_s26 }
   0x6   :  { %173 = vmatprep.subr.bf16.mxu0 %v172_v7  ;;  %s180_s0 = scalar_lea.vmem %s138_s26, 256  ;;  %p185_p1 = scmp.lt.s32.totalorder %s138_s26, %s138_s26 }
   0x7   :  { %p181_p0 = scmp.ne.s32.totalorder %s138_s26, %s180_s0  ;;  %p186_p2 = scmp.lt.s32.totalorder %s180_s0, %s180_s0 }
   0x8   :  { %v23_v9 = vld [vmem:[#allocation2 + $0x8] sm:$0xff] }
   0x9   :  { %175 = vmatpush3.bf16.msra.mxu0 %v172_v7  ;;  %v22_v10 = vld [vmem:[#allocation2] sm:$0xff]  ;;  %p187_p3 = por %p186_p2, %p185_p1 }
   0xb   :  { %p188_p4 = pnand %p187_p3, %p181_p0 }
   0xc   :  { %166 = vmatmul.mubr.msk.f32.vlgmr.msra.gmra.mrb[0].mxu0 %vm19_vm0, %v25_v8 }
  0xdf   :  { %v167_v11 = vpop.f32.mrb[0].mxu0 }
  0xe0   :  { %v113_v12 = vadd.f32 %v167_v11, %v23_v9  ;;  %v103_v13 = vpop.f32.mrb[1].mxu0 }
  0xe1   :  { %v112_v14 = vadd.f32 %v103_v13, %v22_v10 }
  0xe2   :  { %115 = vst.msk [vmem:[#allocation2 + $0x8] sm:$0xff] %vm19_vm0, %v113_v12 }
  0xe3   :  { %114 = vst.msk [vmem:[#allocation2] sm:$0xff] %vm19_vm0, %v112_v14 }
  0xe9   :  { %v120_v16 = vld [vmem:[#allocation2 + $0x8] sm:$0xff] }
  0xea   :  { %v119_v17 = vld [vmem:[#allocation2] sm:$0xff]  ;;  %v129_v18 = vadd.f32 %v150_v15, %v120_v16 }
  0xeb   :  { %v128_v19 = vadd.f32 %v150_v15, %v119_v17 }
  0xec   :  { %131 = vst.msk [vmem:[#allocation3 + $0x8] sm:$0xff] %vm19_vm0, %v129_v18 }
  0xed   :  { %130 = vst.msk [vmem:[#allocation3] sm:$0xff] %vm19_vm0, %v128_v19 }
  0xee   :  { %191 = shalt.err (!%p188_p4)
}
  0xef   :  { %s192_s28 = scalar_lea.hbm %s272_s3, 256 }
  0xf0   :  { %p193_p5 = scmp.ne.s32.totalorder %s272_s3, %s192_s28  ;;  %p196_p6 = scmp.lt.u32.totalorder %s192_s28, %s272_s3 }
  0xf2   :  { %p198_p7 = pnand %p196_p6, %p193_p5 }
  0xf4   :  { %201 = shalt.err (!%p198_p7)
}
  0xf5   :  { %s206_s6 = smov 128   ;;  %s207_s7 = smov 8  }
  0xf6   :  { %143 = dma.vmem_to_hbm [thread:$0]  %s138_s26, 256, %s272_s3, [#allocation4], %s206_s6, %s206_s6, %s207_s7  }
  0xf7   :  { %202 = dma.done.wait [#allocation4], 256  }
  0xf8   :  { %203 = vsyncadd [#allocation4], 4294967040 }
  0xf9   :  { %147 = vsyncpa [#allocation4], 1 }

// kernel: multi_head_attention.6
= control target key start
LH: loop header
LB: loop body
LE: loop exit
PB: predicated region body
PF: predicated region fallthrough
CT: control target
= control target key end

     0   :  { %vm18_vm0 = vcmask 261120   ;;  %v164_v3 = vmov 0.0   ;;  %s220_s1 = inlined_call_operand.vmem [shape: f32[32,32], index: 1, kind: input, shape index: {}]   ;;  %s221_s0 = inlined_call_operand.vmem [shape: f32[16,32], index: 0, kind: input, shape index: {}]   ;;  %s222_s2 = inlined_call_operand.vmem [shape: f32[1,32], index: 2, kind: input, shape index: {}]   ;;  %s223_s3 = inlined_call_operand.vmem [shape: f32[16,32], index: 3, kind: output, shape index: {}]  }
   0x1   :  { %v25_v0 = vld [vmem:[%s220_s1] sm:$0xff]  ;;  %v26_v1 = vld [vmem:[%s220_s1 + $0x8] sm:$0xff]  ;;  %v27_v2 = vld [vmem:[%s220_s1 + $0x10] sm:$0xff]  ;;  %20 = vst.msk [vmem:[#allocation2 + $0x8] sm:$0xff] %vm18_vm0, %v164_v3 }
   0x2   :  { %19 = vst.msk [vmem:[#allocation2] sm:$0xff] %vm18_vm0, %v164_v3  ;;  %v155_v4 = vpack.c.bf16 %v26_v1, %v25_v0  ;;  %v28_v5 = vld [vmem:[%s220_s1 + $0x18] sm:$0xff]  ;;  %v23_v6 = vld [vmem:[%s221_s0] sm:$0xff]  ;;  %v24_v8 = vld [vmem:[%s221_s0 + $0x8] sm:$0xff] }
   0x3   :  { %v159_v7 = vpack.c.bf16 %v28_v5, %v27_v2  ;;  %152 = vmatprep.mubr.msk.f32.mxu0 %vm18_vm0, %v23_v6  ;;  %v137_v15 = vld [vmem:[%s222_s2] ss:$0 sm:$0xff] }
   0x4   :  { %156 = vmatprep.subr.bf16.mxu0 %v155_v4 }
   0x5   :  { %158 = vmatpush3.bf16.msra.mxu0 %v155_v4 }
   0x6   :  { %160 = vmatprep.subr.bf16.mxu0 %v159_v7 }
   0x8   :  { %v22_v9 = vld [vmem:[#allocation2 + $0x8] sm:$0xff] }
   0x9   :  { %162 = vmatpush3.bf16.msra.mxu0 %v159_v7  ;;  %v21_v10 = vld [vmem:[#allocation2] sm:$0xff] }
   0xc   :  { %153 = vmatmul.mubr.msk.f32.vlgmr.msra.gmra.mrb[0].mxu0 %vm18_vm0, %v24_v8 }
  0xdf   :  { %v154_v11 = vpop.f32.mrb[0].mxu0 }
  0xe0   :  { %v112_v12 = vadd.f32 %v154_v11, %v22_v9  ;;  %v102_v13 = vpop.f32.mrb[1].mxu0 }
  0xe1   :  { %v111_v14 = vadd.f32 %v102_v13, %v21_v10 }
  0xe2   :  { %114 = vst.msk [vmem:[#allocation2 + $0x8] sm:$0xff] %vm18_vm0, %v112_v12 }
  0xe3   :  { %113 = vst.msk [vmem:[#allocation2] sm:$0xff] %vm18_vm0, %v111_v14 }
  0xe9   :  { %v119_v16 = vld [vmem:[#allocation2 + $0x8] sm:$0xff] }
  0xea   :  { %v128_v17 = vadd.f32 %v137_v15, %v119_v16  ;;  %v118_v18 = vld [vmem:[#allocation2] sm:$0xff] }
  0xeb   :  { %v127_v19 = vadd.f32 %v137_v15, %v118_v18 }
  0xec   :  { %130 = vst.msk [vmem:[%s223_s3 + $0x8] sm:$0xff] %vm18_vm0, %v128_v17 }
  0xed   :  { %129 = vst.msk [vmem:[%s223_s3] sm:$0xff] %vm18_vm0, %v127_v19 }

// kernel: multi_head_attention.8
= control target key start
LH: loop header
LB: loop body
LE: loop exit
PB: predicated region body
PF: predicated region fallthrough
CT: control target
= control target key end

     0   :  { %s1297_s15 = smov 0   ;;  %s1299_s16 = smov 0   ;;  %s1423_s0 = inlined_call_operand.vmem [shape: f32[2,8,32], index: 0, kind: input, shape index: {}]   ;;  %s1424_s1 = inlined_call_operand.vmem [shape: f32[2,8,32], index: 1, kind: input, shape index: {}]   ;;  %s1425_s2 = inlined_call_operand.vmem [shape: f32[2,8,32], index: 2, kind: input, shape index: {}]   ;;  %s1426_s3 = inlined_call_operand.vmem [shape: s8[2,8,8], index: 3, kind: input, shape index: {}]   ;;  %s1427_s4 = inlined_call_operand.vmem [shape: f32[2,8,32], index: 4, kind: output, shape index: {}]  }
   0x1   :  { %s1301_s17 = smov 0  }
   0x2 LB: > { %s26_s18 = sadd.s32 1, %s1257_s16  ;;  %p1114_p0 = scmp.ge.s32.totalorder %s1261_s17, 1  ;;  %s1261_s17 = sphi %s1301_s17, %s14_s17   ;;  %s1257_s16 = sphi %s1299_s16, %s1431_s16   ;;  %s1253_s15 = sphi %s1297_s15, %s1430_s15  }
   0x3   : > { %p28_p1 = scmp.ge.s32.totalorder %s26_s18, 2  ;;  %p212_p2 = scmp.lt.s32.totalorder %s1261_s17, 3 }
   0x5   : > { %s1433_s18 = smov (%p28_p1, %s26_s18), 0  ;;  %p213_p3 = pnand %p1114_p0, %p212_p2 }
   0x6   : > { %p257_p4 = scmp.lt.s32.totalorder (!%p213_p3), %s1253_s15, 1  ;;  %v1263_v0 = vmov (!%p213_p3), 0.0   ;;  %vm1264_vm0 = vmmov (!%p213_p3), 0   ;;  %vm293_vm1 = vcmask (!%p213_p3), 64512   ;;  %v1265_v5 = vmov (!%p213_p3), 0   ;;  %s1266_s30 = smov (!%p213_p3), 120  }
   0x7   : > { %216 = sbr.rel (%p213_p3) target bundleno = 1460 (0x5b4), region = 36  ;;  %1150 = vmatprep.subr.mxu0 (!%p213_p3), %v1263_v0  ;;  %1152 = vmatprep.mubr.msk.f32.mxu0 (!%p213_p3), %vm1264_vm0, %v1263_v0  ;;  %s1267_s5 = smov (!%p213_p3), 112   ;;  %vm637_vm4 = vcmask (!%p213_p3), 130112   ;;  %vm816_vm5 = vcmask (!%p213_p3), 195712   ;;  %vm995_vm6 = vcmask (!%p213_p3), 261312  }
   0x8   : > { %1155 = vmatprep.subr.mxu1 (!%p213_p3), %v1263_v0  ;;  %1157 = vmatprep.mubr.msk.f32.mxu1 (!%p213_p3), %vm1264_vm0, %v1263_v0  ;;  %s1268_s6 = smov (!%p213_p3), 104   ;;  %s1269_s13 = smov (!%p213_p3), 8  }
   0x9   : > { %s1270_s14 = smov (!%p213_p3), 16  }
   0xe   : > { %s1435_s15 = smov (!%p257_p4, %s1253_s15), 1 }
   0xf   : > { %s1321_s19 = sshll.u32 %s1435_s15, 3  ;;  %s1118_s26 = sshll.u32 %s1435_s15, 1 }
  0x10   : > { %s267_s22 = scalar_lea.vmem %s1424_s1, %s1321_s19  ;;  %s263_s25 = scalar_lea.vmem %s1423_s0, %s1321_s19 }
  0x11   : > { %v292_v1 = vld [vmem:[%s267_s22] sm:$0xff]  ;;  %s278_s29 = scalar_lea.vmem %s1426_s3, %s1118_s26  ;;  %s271_s9 = scalar_lea.vmem %s1425_s2, %s1321_s19 }
  0x12   : > { %v290_v2 = vld [vmem:[%s263_s25] sm:$0xff]  ;;  %1151 = vmatpush3.xpose.msk.msra.mxu0 %vm293_vm1, %v292_v1  ;;  %467 = vrot.lane.b32.xlu1 %v292_v1, %s1266_s30  ;;  %s1380_s12 = scalar_lea.vmem %s1427_s4, %s1321_s19  ;;  %s1271_s15 = smov 24  }
  0x13   : > { %v291_v3 = vmul.f32 0.35355338, %v290_v2  ;;  %1165 = vmatprep.subr.mxu0 %v1263_v0  ;;  %v288_v4 = vld [vmem:[%s278_s29] sm:$0x3] }
  0x14   : > { %vm289_vm2 = vnez %v288_v4  ;;  %v1356_v18 = vld [vmem:[%s271_s9] sm:$0xff] }
  0x15   : > { %1153 = vmatmul.mubr.msk.f32.vlgmr.msra.gmra.mrb[0].mxu0 %vm293_vm1, %v291_v3  ;;  %v370_v6 = vsel %vm289_vm2, 16843009, %v1265_v5  ;;  %1156 = vmatpush3.msra.mxu1 %v1356_v18 }
  0x16   : > { %1167 = vmatprep.mubr.msk.f32.mxu0 %vm1264_vm0, %v1263_v0  ;;  %v371_v7 = vunpack.c.0.s8 %v370_v6  ;;  %464 = vrot.lane.b32.xlu1 %v291_v3, %s1266_s30 }
  0x17   : > { %1160 = vmatprep.subr.mxu1 %v1263_v0 }
  0x18   : > { %vm1339_vm3 = vcmp.ne.s32.totalorder %v371_v7, 0 }
  0x1a   : > { %643 = vrot.lane.b32.xlu1 %v291_v3, %s1267_s5 }
  0x1e   : > { %825 = vrot.lane.b32.xlu1 %v292_v1, %s1268_s6 }
  0x22   : > { %822 = vrot.lane.b32.xlu1 %v291_v3, %s1268_s6 }
  0x84   : > { %v468_v19 = vpop.permute.xlu1 %467 }
  0x88   : > { %v465_v21 = vpop.permute.xlu1 %464 }
  0x8c   : > { %v644_v23 = vpop.permute.xlu1 %643 }
  0x90   : > { %v826_v26 = vpop.permute.xlu1 %825 }
  0x94   : > { %v823_v27 = vpop.permute.xlu1 %822 }
  0xe8   : > { %v366_v9 = vpop.f32.mrb[0].mxu0 }
  0xe9   : > { %v373_v10 = vsel %vm1339_vm3, %v366_v9, -1e+30  ;;  %v1154_v11 = vpop.f32.mrb[1].mxu0 }
  0xea   : > { %v374_v12 = vsel %vm293_vm1, %v373_v10, -inf }
  0xeb   : > { %375 = vmax.xlane.f32.xlu0 %v374_v12 }
 0x178   : > { %v376_v13 = vpop.xlane.xlu0 %375 }
 0x179   : > { %v377_v14 = vsub.f32 %v373_v10, %v376_v13 }
 0x17b   : > { %v378_v15 = vmul.f32 1.442695, %v377_v14 }
 0x17d   : > { %1223 = vpow2.f32 %v378_v15 }
 0x187   : > { %v1224_v16 = vpop.eup %1223 }
 0x188   : > { %v380_v17 = vsel %vm293_vm1, %v1224_v16, 0.0 }
 0x189   : > { %381 = vadd.xlane.f32.xlu0 %v380_v17 }
 0x19f   : > { %646 = vrot.lane.b32.xlu0 %v292_v1, %s1267_s5 }
 0x216   : > { %v382_v20 = vpop.xlane.xlu0 %381 }
 0x217   : > { %1225 = vrcp.f32 %v382_v20 }
 0x21a   : > { %v647_v25 = vpop.permute.xlu0 %646 }
 0x221   : > { %v1226_v22 = vpop.eup %1225 }
 0x222   : > { %v384_v24 = vmul.f32 %v1226_v22, %v1224_v16 }
 0x224   : > { %1158 = vmatmul.mubr.msk.f32.vlgmr.msra.gmra.mrb[0].mxu1 %vm293_vm1, %v384_v24 }
 0x225   : > { %1161 = vmatpush3.xpose.msk.msra.mxu1 %vm293_vm1, %v468_v19  ;;  %1162 = vmatprep.mubr.msk.f32.mxu1 %vm1264_vm0, %v1263_v0 }
 0x226   : > { %1170 = vmatprep.subr.mxu1 %v1263_v0 }
 0x228   : > { %1163 = vmatmul.mubr.msk.f32.vlgmr.msra.gmra.mrb[2].mxu1 %vm293_vm1, %v465_v21 }
 0x229   : > { %1171 = vmatpush3.xpose.msk.msra.mxu1 %vm293_vm1, %v647_v25  ;;  %1172 = vmatprep.mubr.msk.f32.mxu1 %vm1264_vm0, %v1263_v0 }
 0x22a   : > { %1180 = vmatprep.subr.mxu1 %v1263_v0 }
 0x22c   : > { %1173 = vmatmul.mubr.msk.f32.vlgmr.msra.gmra.mrb[4].mxu1 %vm293_vm1, %v644_v23 }
 0x22d   : > { %1181 = vmatpush3.xpose.msk.msra.mxu1 %vm293_vm1, %v826_v26  ;;  %1182 = vmatprep.mubr.msk.f32.mxu1 %vm1264_vm0, %v1263_v0 }
 0x230   : > { %1183 = vmatmul.mubr.msk.f32.vlgmr.msra.gmra.mrb[6].mxu1 %vm293_vm1, %v823_v27 }
 0x2f7   : > { %v455_v28 = vpop.f32.mrb[0].mxu1 }
 0x2f8   : > { %459 = vst.msk [vmem:[%s1380_s12] sm:$0xff] %vm293_vm1, %v455_v28  ;;  %v1159_v29 = vpop.f32.mrb[1].mxu1 }
 0x2fb   : > { %v539_v30 = vpop.f32.mrb[2].mxu1 }
 0x2fc   : > { %v543_v31 = vsel %vm1339_vm3, %v539_v30, -1e+30  ;;  %v1164_v32 = vpop.f32.mrb[3].mxu1 }
 0x2fd   : > { %v544_v33 = vsel %vm293_vm1, %v543_v31, -inf }
 0x2fe   : > { %545 = vmax.xlane.f32.xlu1 %v544_v33 }
 0x2ff   : > { %v718_v34 = vpop.f32.mrb[4].mxu1 }
 0x300   : > { %v722_v35 = vsel %vm1339_vm3, %v718_v34, -1e+30  ;;  %v1174_v36 = vpop.f32.mrb[5].mxu1 }
 0x301   : > { %v723_v37 = vsel %vm293_vm1, %v722_v35, -inf }
 0x302   : > { %724 = vmax.xlane.f32.xlu0 %v723_v37 }
 0x303   : > { %v897_v38 = vpop.f32.mrb[6].mxu1 }
 0x304   : > { %v901_v39 = vsel %vm1339_vm3, %v897_v38, -1e+30  ;;  %v1184_v40 = vpop.f32.mrb[7].mxu1 }
 0x305   : > { %v902_v41 = vsel %vm293_vm1, %v901_v39, -inf }
 0x306   : > { %903 = vmax.xlane.f32.xlu1 %v902_v41 }
 0x38b   : > { %v546_v42 = vpop.xlane.xlu1 %545 }
 0x38c   : > { %v547_v43 = vsub.f32 %v543_v31, %v546_v42 }
 0x38e   : > { %v548_v44 = vmul.f32 1.442695, %v547_v43 }
 0x38f   : > { %v725_v45 = vpop.xlane.xlu0 %724 }
 0x390   : > { %1227 = vpow2.f32 %v548_v44  ;;  %v726_v46 = vsub.f32 %v722_v35, %v725_v45 }
 0x392   : > { %v727_v47 = vmul.f32 1.442695, %v726_v46 }
 0x393   : > { %v904_v52 = vpop.xlane.xlu1 %903 }
 0x394   : > { %1229 = vpow2.f32 %v727_v47  ;;  %v905_v53 = vsub.f32 %v901_v39, %v904_v52 }
 0x396   : > { %v906_v54 = vmul.f32 1.442695, %v905_v53 }
 0x398   : > { %1231 = vpow2.f32 %v906_v54 }
 0x39a   : > { %v1228_v48 = vpop.eup %1227 }
 0x39b   : > { %v550_v49 = vsel %vm293_vm1, %v1228_v48, 0.0 }
 0x39c   : > { %551 = vadd.xlane.f32.xlu1 %v550_v49 }
 0x39e   : > { %v1230_v50 = vpop.eup %1229 }
 0x39f   : > { %v729_v51 = vsel %vm293_vm1, %v1230_v50, 0.0 }
 0x3a0   : > { %730 = vadd.xlane.f32.xlu0 %v729_v51 }
 0x3a2   : > { %v1232_v55 = vpop.eup %1231 }
 0x3a3   : > { %v908_v56 = vsel %vm293_vm1, %v1232_v55, 0.0 }
 0x3ad   : > { %736 = vrot.lane.b32.xlu1 %v1356_v18, %s1267_s5 }
 0x3b6   : > { %557 = vrot.lane.b32.xlu0 %v1356_v18, %s1266_s30 }
 0x3d1   : > { %909 = vadd.xlane.f32.xlu1 %v908_v56 }
 0x3e2   : > { %915 = vrot.lane.b32.xlu1 %v1356_v18, %s1268_s6 }
 0x429   : > { %v552_v57 = vpop.xlane.xlu1 %551 }
 0x42a   : > { %1233 = vrcp.f32 %v552_v57 }
 0x42d   : > { %v731_v58 = vpop.xlane.xlu0 %730  ;;  %v737_v62 = vpop.permute.xlu1 %736 }
 0x42e   : > { %1235 = vrcp.f32 %v731_v58 }
 0x431   : > { %v558_v59 = vpop.permute.xlu0 %557 }
 0x432   : > { %1166 = vmatpush3.msra.mxu0 %v558_v59 }
 0x433   : > { %1175 = vmatprep.subr.mxu0 %v1263_v0 }
 0x434   : > { %v1234_v60 = vpop.eup %1233 }
 0x435   : > { %v554_v61 = vmul.f32 %v1234_v60, %v1228_v48 }
 0x437   : > { %1168 = vmatmul.mubr.msk.f32.vlgmr.msra.gmra.mrb[2].mxu0 %vm293_vm1, %v554_v61 }
 0x438   : > { %v1236_v63 = vpop.eup %1235  ;;  %1176 = vmatpush3.msra.mxu0 %v737_v62  ;;  %1177 = vmatprep.mubr.msk.f32.mxu0 %vm1264_vm0, %v1263_v0 }
 0x439   : > { %v733_v1 = vmul.f32 %v1236_v63, %v1230_v50  ;;  %1185 = vmatprep.subr.mxu0 %v1263_v0 }
 0x43b   : > { %1178 = vmatmul.mubr.msk.f32.vlgmr.msra.gmra.mrb[4].mxu0 %vm293_vm1, %v733_v1 }
 0x43c   : > { %1187 = vmatprep.mubr.msk.f32.mxu0 %vm1264_vm0, %v1263_v0 }
 0x45e   : > { %v910_v2 = vpop.xlane.xlu1 %909 }
 0x45f   : > { %1237 = vrcp.f32 %v910_v2 }
 0x462   : > { %v916_v3 = vpop.permute.xlu1 %915 }
 0x463   : > { %1186 = vmatpush3.msra.mxu0 %v916_v3 }
 0x469   : > { %v1238_v4 = vpop.eup %1237 }
 0x46a   : > { %v912_v5 = vmul.f32 %v1238_v4, %v1232_v55 }
 0x46c   : > { %1188 = vmatmul.mubr.msk.f32.vlgmr.msra.gmra.mrb[6].mxu0 %vm293_vm1, %v912_v5 }
 0x50a   : > { %v629_v6 = vpop.f32.mrb[2].mxu0 }
 0x50b   : > { %634 = vrot.lane.b32.xlu0 %v629_v6, %s1269_s13  ;;  %v1169_v7 = vpop.f32.mrb[3].mxu0 }
 0x50e   : > { %v808_v8 = vpop.f32.mrb[4].mxu0 }
 0x50f   : > { %813 = vrot.lane.b32.xlu1 %v808_v8, %s1270_s14  ;;  %v1179_v9 = vpop.f32.mrb[5].mxu0 }
 0x53f   : > { %v987_v0 = vpop.f32.mrb[6].mxu0 }
 0x540   : > { %992 = vrot.lane.b32.xlu0 %v987_v0, %s1271_s15  ;;  %v1189_v10 = vpop.f32.mrb[7].mxu0 }
 0x57d   : > { %v635_v11 = vpop.permute.xlu0 %634 }
 0x57e   : > { %638 = vst.msk [vmem:[%s1380_s12] sm:$0xff] %vm637_vm4, %v635_v11 }
 0x581   : > { %v814_v12 = vpop.permute.xlu1 %813 }
 0x582   : > { %817 = vst.msk [vmem:[%s1380_s12] sm:$0xff] %vm816_vm5, %v814_v12 }
 0x5b2   : > { %v993_v13 = vpop.permute.xlu0 %992 }
 0x5b3   : > { %996 = vst.msk [vmem:[%s1380_s12] sm:$0xff] %vm995_vm6, %v993_v13 }
 0x5b4 PF: > { %s14_s17 = sadd.s32 1, %s1261_s17   ;;  %s1430_s15 = smov %s1257_s16 }
 0x5b5   : > { %p11_p5 = scmp.ge.s32.totalorder %s14_s17, 4   ;;  %s1431_s16 = smov %s1433_s18 }
 0x5b7   :  { %13 = sbr.rel (!%p11_p5) target bundleno = 2 (0x2), region = 75 }

</bundles_post_ra>
